<compile_context>
chip_gen: v7x
topology: tpu7x:2x2x1
jax: 0.10.0
libtpu: 0.0.40
codegen_flags: <defaults>
</compile_context>

<pallas_src>
import functools

import jax
import jax.numpy as jnp
from jax.experimental import pallas as pl
from jax.experimental.pallas import tpu as pltpu

MAX_VAL = 10000.0
OUT_LANES = 128  # lane-dense output slab; metrics live in the first few lanes


def _num_tensorcores():
    """Best-effort TensorCore count per device (1 on v5e/v6e, 2 on v7x)."""
    try:
        info = pltpu.get_tpu_info()
        for attr in ("num_cores", "core_count", "num_tensorcores"):
            v = getattr(info, attr, None)
            if isinstance(v, int) and v > 0:
                return v
    except Exception:
        pass
    try:
        return max(1, int(getattr(jax.devices()[0], "num_cores", 1)))
    except Exception:
        return 1


def _vmem_capacity_bytes():
    try:
        return int(pltpu.get_tpu_info().vmem_capacity_bytes)
    except Exception:
        return 64 * 1024 * 1024  # conservative fallback (v7x-sized)


def _ranker_kernel(scores_ref, hl_ref, out_ref, *, ks, num_hist, total_b,
                   tile_rows, steps_per_split):
    c = pl.program_id(0)   # split index (TensorCore shard when >1 core)
    i = pl.program_id(1)   # batch-tile step within the split

    scores = scores_ref[...].astype(jnp.float32)   # (TB, N)
    hl = hl_ref[...]                               # (TB, num_hist + 1) int32
    labels = hl[:, num_hist:num_hist + 1]          # (TB, 1)

    tb, n = scores.shape
    col = jax.lax.broadcasted_iota(jnp.int32, (tb, n), 1)

    # History masking folded into one select chain: score - MAX_VAL at history
    # columns (column index == N falls into the dropped pad column -> no-op).
    # Idempotent for duplicate ids, matching scatter_ semantics.
    masked = scores
    if num_hist > 0:
        shifted = scores - jnp.float32(MAX_VAL)
        for hcol in range(num_hist):
            masked = jnp.where(col == hl[:, hcol:hcol + 1], shifted, masked)

    # Lane-wise reductions on the (idle) MXU: dot against a ones column.
    ones_n = jnp.ones((n, 1), jnp.float32)
    pred = jnp.dot(jnp.where(col == labels, masked, 0.0), ones_n,
                   preferred_element_type=jnp.float32)                 # (TB, 1)
    valid_len = jnp.dot((masked > -jnp.float32(MAX_VAL)).astype(jnp.float32),
                        ones_n, preferred_element_type=jnp.float32)    # (TB, 1)
    rank = jnp.dot((pred < masked).astype(jnp.float32), ones_n,
                   preferred_element_type=jnp.float32)                 # (TB, 1)

    # Row-validity mask: rows beyond the true batch (cdiv padding / split
    # overshoot) must contribute exactly 0.  Selects (not multiplies) so any
    # garbage in padded rows cannot propagate NaN/Inf into the sums.
    tile_idx = c * steps_per_split + i
    row = jax.lax.broadcasted_iota(jnp.int32, (tb, 1), 0) + tile_idx * tile_rows
    row_valid = row < total_b
    safe_valid = jnp.where(row_valid, valid_len, 1.0)

    zero = jnp.zeros_like(rank)
    contribs = []
    for k in ks:
        ind = (rank < float(k)).astype(jnp.float32)
        ndcg = ind / jnp.log2(rank + 2.0)
        contribs.append(jnp.sum(jnp.where(row_valid, ndcg, zero)))
        contribs.append(jnp.sum(jnp.where(row_valid, ind, zero)))
    contribs.append(jnp.sum(jnp.where(row_valid, 1.0 / (rank + 1.0), zero)))
    contribs.append(jnp.sum(jnp.where(row_valid, 1.0 - rank / safe_valid, zero)))

    # Build a sublane-aligned (1, 8, 128) update; lane m holds metric m
    # (replicated across sublanes — wrapper reads sublane 0).
    lane = jax.lax.broadcasted_iota(jnp.int32, (1, 8, OUT_LANES), 2)
    upd = jnp.zeros((1, 8, OUT_LANES), jnp.float32)
    for m, cval in enumerate(contribs):
        upd = jnp.where(lane == m, cval, upd)

    # Accumulate directly into the resident output block (constant over axis i).
    @pl.when(i == 0)
    def _():
        out_ref[...] = jnp.zeros_like(out_ref)

    out_ref[...] += upd


def ranker_pallas(scores, labels, history_ids=None, ks=(10, 50)):
    """Returns a (2*len(ks)+2,) float32 vector of metrics (batch means)."""
    scores = jnp.asarray(scores)
    if not jnp.issubdtype(scores.dtype, jnp.floating):
        scores = scores.astype(jnp.float32)   # stream bf16/f32 as-is otherwise
    b, n = scores.shape
    labels = jnp.asarray(labels).reshape(-1).astype(jnp.int32)[:, None]   # (B, 1)

    if history_ids is None:
        num_hist = 0
        hl = labels                                                        # (B, 1)
    else:
        hist = jnp.asarray(history_ids, jnp.int32)
        num_hist = hist.shape[1]
        hl = jnp.concatenate([hist, labels], axis=1)                       # (B, H+1)
    hw = hl.shape[1]

    # --- Per-chip VMEM budget --------------------------------------------
    vmem_cap = _vmem_capacity_bytes()                  # 64 MiB (v7x) / 128 MiB
    vmem_limit = min(vmem_cap * 3 // 4, 64 * 1024 * 1024)   # 48 MiB / 64 MiB
    vmem_budget = vmem_limit // 2                      # headroom for temporaries

    # --- Batch-tile sizing (bytes, not a fixed row cap) --------------------
    itemsize = scores.dtype.itemsize
    sublane = max(8, 32 // itemsize)   # 8 rows for f32, 16 for bf16
    # Working set per tile row: double-buffered scores block + ~6 (tb, N) f32
    # temporaries + double-buffered lane-padded (tb, 128) int32 hist block.
    bytes_per_row = (2 * itemsize + 6 * 4) * n + 2 * 4 * 128
    tb_budget = vmem_budget // max(bytes_per_row, 1)
    # Target ~4 MiB lane-dense scores block per buffer to amortize the
    # ~0.35 us per-grid-step overhead for small-N / large-B workloads.
    tb_target = (4 * 1024 * 1024) // max(n * itemsize, 1)
    tb = max(sublane, min(tb_budget, tb_target, 4096))
    tb = (tb // sublane) * sublane
    if b >= sublane:
        tb = min(tb, (b // sublane) * sublane)   # multiple of sublane and <= B
    else:
        tb = b                                    # tiny batch: full-extent block

    n_tiles = pl.cdiv(b, tb)
    cores = _num_tensorcores()
    n_splits = 2 if (cores >= 2 and n_tiles >= 2) else 1   # skip split on 1-TC chips
    steps = pl.cdiv(n_tiles, n_splits)
    last_tile = n_tiles - 1

    def row_block(c, i):
        # Clamp so split overshoot never DMAs out of bounds; the in-kernel
        # (unclamped) row mask zeroes those tiles' contributions.
        return jnp.minimum(c * steps + i, last_tile)

    kernel = functools.partial(
        _ranker_kernel, ks=tuple(ks), num_hist=num_hist, total_b=b,
        tile_rows=tb, steps_per_split=steps)

    out = pl.pallas_call(
        kernel,
        out_shape=jax.ShapeDtypeStruct((n_splits, 8, OUT_LANES), jnp.float32),
        grid_spec=pltpu.PrefetchScalarGridSpec(
            num_scalar_prefetch=0,
            grid=(n_splits, steps),
            in_specs=[
                pl.BlockSpec((tb, n), lambda c, i: (row_block(c, i), 0)),
                pl.BlockSpec((tb, hw), lambda c, i: (row_block(c, i), 0)),
            ],
            out_specs=pl.BlockSpec((1, 8, OUT_LANES), lambda c, i: (c, 0, 0)),
        ),
        compiler_params=pltpu.CompilerParams(
            dimension_semantics=("parallel", "arbitrary"),
            vmem_limit_bytes=int(vmem_limit),
        ),
    )(scores, hl)

    metrics = jnp.sum(out[:, 0, :], axis=0) / jnp.float32(b)
    return metrics[: 2 * len(ks) + 2]


def ranker_reference(scores, labels, history_ids, ks=(10, 50)):
    """Pure-JAX reference mirroring the PyTorch module exactly."""
    scores = jnp.asarray(scores, jnp.float32)
    b, n = scores.shape
    labels = jnp.asarray(labels).reshape(-1).astype(jnp.int32)
    if history_ids is not None:
        mask = jnp.zeros((b, n + 1), jnp.float32)
        mask = mask.at[jnp.arange(b)[:, None], history_ids].set(-MAX_VAL)[:, :-1]
        scores = scores + mask
    predicts = scores[jnp.arange(b), labels][:, None]
    valid_length = jnp.sum((scores > -MAX_VAL).astype(jnp.float32), -1)
    rank = jnp.sum((predicts < scores).astype(jnp.float32), -1)
    res = []
    for k in ks:
        ind = (rank < k).astype(jnp.float32)
        res.append(jnp.mean(1.0 / jnp.log2(rank + 2.0) * ind))
        res.append(jnp.mean(ind))
    res.append(jnp.mean(1.0 / (rank + 1.0)))
    res.append(jnp.mean(1.0 - rank / valid_length))
    return jnp.stack(res)


if __name__ == "__main__":
    key = jax.random.PRNGKey(0)
    k_s, k_l, k_h = jax.random.split(key, 3)

    # Case 1: standard small shapes with history masking.
    B, N, H = 16, 128, 4
    scores = jax.random.normal(k_s, (B, N), dtype=jnp.float32)
    labels = jax.random.randint(k_l, (B, 1), 0, N, dtype=jnp.int32)
    history_ids = jax.random.randint(k_h, (B, H), 0, N + 1, dtype=jnp.int32)

    out = jax.block_until_ready(ranker_pallas(scores, labels, history_ids, ks=(10, 50)))
    ref = ranker_reference(scores, labels, history_ids, ks=(10, 50))
    assert jnp.allclose(out, ref, atol=1e-5, rtol=1e-5), (out, ref)

    # Case 2: batch not divisible by 8, no history (cdiv + row-mask path).
    B2, N2 = 13, 200
    s2 = jax.random.normal(k_s, (B2, N2), dtype=jnp.float32)
    l2 = jax.random.randint(k_l, (B2, 1), 0, N2, dtype=jnp.int32)
    out2 = jax.block_until_ready(ranker_pallas(s2, l2, None, ks=(5, 20)))
    ref2 = ranker_reference(s2, l2, None, ks=(5, 20))
    assert jnp.allclose(out2, ref2, atol=1e-5, rtol=1e-5), (out2, ref2)

    print("KERNEL_OK")
</pallas_src>

<mosaic_0001>
module attributes {stable_mosaic.version = 11 : i64} {
  func.func @_ranker_kernel(%arg0: i32, %arg1: i32, %arg2: memref<16x128xf32, #tpu.memory_space<vmem>>, %arg3: memref<16x5xi32, #tpu.memory_space<vmem>>, %arg4: memref<1x8x128xf32, #tpu.memory_space<vmem>>) attributes {dimension_semantics = [#tpu.dimension_semantics<parallel>, #tpu.dimension_semantics<arbitrary>], iteration_bounds = array<i64: 1, 1>, scalar_prefetch = 0 : i64, scratch_operands = 0 : i64, tpu.core_type = #tpu.core_type<tc>, window_params = [{transform_indices = @transform_0, window_bounds = array<i64: 16, 128>}, {transform_indices = @transform_1, window_bounds = array<i64: 16, 5>}, {transform_indices = @transform_2, window_bounds = array<i64: 1, 8, 128>}]} {
    %c0 = arith.constant 0 : index
    %c0_0 = arith.constant 0 : index
    %0 = vector.load %arg2[%c0, %c0_0] : memref<16x128xf32, #tpu.memory_space<vmem>>, vector<16x128xf32>
    %c0_1 = arith.constant 0 : index
    %c0_2 = arith.constant 0 : index
    %1 = vector.load %arg3[%c0_1, %c0_2] : memref<16x5xi32, #tpu.memory_space<vmem>>, vector<16x5xi32>
    %2 = vector.extract_strided_slice %1 {offsets = [0, 4], sizes = [16, 1], strides = [1, 1]} : vector<16x5xi32> to vector<16x1xi32>
    %3 = tpu.iota {dimensions = array<i32: 1>} : vector<16x128xi32>
    %cst = arith.constant 1.000000e+04 : f32
    %4 = vector.broadcast %cst : f32 to vector<16x128xf32>
    %5 = arith.subf %0, %4 : vector<16x128xf32>
    %6 = vector.extract_strided_slice %1 {offsets = [0, 0], sizes = [16, 1], strides = [1, 1]} : vector<16x5xi32> to vector<16x1xi32>
    %7 = vector.broadcast %6 : vector<16x1xi32> to vector<16x128xi32>
    %8 = arith.cmpi eq, %3, %7 : vector<16x128xi32>
    %9 = arith.select %8, %5, %0 : vector<16x128xi1>, vector<16x128xf32>
    %10 = vector.extract_strided_slice %1 {offsets = [0, 1], sizes = [16, 1], strides = [1, 1]} : vector<16x5xi32> to vector<16x1xi32>
    %11 = vector.broadcast %10 : vector<16x1xi32> to vector<16x128xi32>
    %12 = arith.cmpi eq, %3, %11 : vector<16x128xi32>
    %13 = arith.select %12, %5, %9 : vector<16x128xi1>, vector<16x128xf32>
    %14 = vector.extract_strided_slice %1 {offsets = [0, 2], sizes = [16, 1], strides = [1, 1]} : vector<16x5xi32> to vector<16x1xi32>
    %15 = vector.broadcast %14 : vector<16x1xi32> to vector<16x128xi32>
    %16 = arith.cmpi eq, %3, %15 : vector<16x128xi32>
    %17 = arith.select %16, %5, %13 : vector<16x128xi1>, vector<16x128xf32>
    %18 = vector.extract_strided_slice %1 {offsets = [0, 3], sizes = [16, 1], strides = [1, 1]} : vector<16x5xi32> to vector<16x1xi32>
    %19 = vector.broadcast %18 : vector<16x1xi32> to vector<16x128xi32>
    %20 = arith.cmpi eq, %3, %19 : vector<16x128xi32>
    %21 = arith.select %20, %5, %17 : vector<16x128xi1>, vector<16x128xf32>
    %cst_3 = arith.constant 1.000000e+00 : f32
    %22 = vector.broadcast %cst_3 : f32 to vector<128x1xf32>
    %23 = vector.broadcast %2 : vector<16x1xi32> to vector<16x128xi32>
    %24 = arith.cmpi eq, %3, %23 : vector<16x128xi32>
    %cst_4 = arith.constant 0.000000e+00 : f32
    %25 = vector.broadcast %cst_4 : f32 to vector<16x128xf32>
    %26 = arith.select %24, %21, %25 : vector<16x128xi1>, vector<16x128xf32>
    %cst_5 = arith.constant dense<0.000000e+00> : vector<16x1xf32>
    %27 = tpu.matmul %26, %22, %cst_5 {dimension_numbers = #tpu.dot_dimension_numbers<[1], [0], [0], [1], [0, 0, 1, 1], [], []>} : vector<16x128xf32>, vector<128x1xf32>, vector<16x1xf32> -> vector<16x1xf32>
    %cst_6 = arith.constant 0.000000e+00 : f32
    %cst_7 = arith.constant 1.000000e+04 : f32
    %28 = arith.subf %cst_6, %cst_7 : f32
    %29 = vector.broadcast %28 : f32 to vector<16x128xf32>
    %30 = arith.cmpf ogt, %21, %29 : vector<16x128xf32>
    %31 = arith.extui %30 : vector<16x128xi1> to vector<16x128xi32>
    %32 = arith.sitofp %31 : vector<16x128xi32> to vector<16x128xf32>
    %cst_8 = arith.constant dense<0.000000e+00> : vector<16x1xf32>
    %33 = tpu.matmul %32, %22, %cst_8 {dimension_numbers = #tpu.dot_dimension_numbers<[1], [0], [0], [1], [0, 0, 1, 1], [], []>} : vector<16x128xf32>, vector<128x1xf32>, vector<16x1xf32> -> vector<16x1xf32>
    %34 = vector.broadcast %27 : vector<16x1xf32> to vector<16x128xf32>
    %35 = arith.cmpf olt, %34, %21 : vector<16x128xf32>
    %36 = arith.extui %35 : vector<16x128xi1> to vector<16x128xi32>
    %37 = arith.sitofp %36 : vector<16x128xi32> to vector<16x128xf32>
    %cst_9 = arith.constant dense<0.000000e+00> : vector<16x1xf32>
    %38 = tpu.matmul %37, %22, %cst_9 {dimension_numbers = #tpu.dot_dimension_numbers<[1], [0], [0], [1], [0, 0, 1, 1], [], []>} : vector<16x128xf32>, vector<128x1xf32>, vector<16x1xf32> -> vector<16x1xf32>
    %c1_i32 = arith.constant 1 : i32
    %39 = arith.muli %arg0, %c1_i32 : i32
    %40 = arith.addi %39, %arg1 : i32
    %41 = tpu.iota {dimensions = array<i32: 0>} : vector<16x1xi32>
    %c16_i32 = arith.constant 16 : i32
    %42 = arith.muli %40, %c16_i32 : i32
    %43 = vector.broadcast %42 : i32 to vector<16x1xi32>
    %44 = arith.addi %41, %43 : vector<16x1xi32>
    %c16_i32_10 = arith.constant 16 : i32
    %45 = vector.broadcast %c16_i32_10 : i32 to vector<16x1xi32>
    %46 = arith.cmpi slt, %44, %45 : vector<16x1xi32>
    %cst_11 = arith.constant 1.000000e+00 : f32
    %47 = vector.broadcast %cst_11 : f32 to vector<16x1xf32>
    %48 = arith.select %46, %33, %47 : vector<16x1xi1>, vector<16x1xf32>
    %cst_12 = arith.constant 0.000000e+00 : f32
    %49 = vector.broadcast %cst_12 : f32 to vector<16x1xf32>
    %cst_13 = arith.constant 1.000000e+01 : f32
    %50 = vector.broadcast %cst_13 : f32 to vector<16x1xf32>
    %51 = arith.cmpf olt, %38, %50 : vector<16x1xf32>
    %52 = arith.extui %51 : vector<16x1xi1> to vector<16x1xi32>
    %53 = arith.sitofp %52 : vector<16x1xi32> to vector<16x1xf32>
    %cst_14 = arith.constant 2.000000e+00 : f32
    %54 = vector.broadcast %cst_14 : f32 to vector<16x1xf32>
    %55 = arith.addf %38, %54 : vector<16x1xf32>
    %56 = math.log %55 : vector<16x1xf32>
    %cst_15 = arith.constant 2.000000e+00 : f32
    %57 = math.log %cst_15 : f32
    %58 = vector.broadcast %57 : f32 to vector<16x1xf32>
    %59 = arith.divf %56, %58 : vector<16x1xf32>
    %60 = arith.divf %53, %59 : vector<16x1xf32>
    %61 = arith.select %46, %60, %49 : vector<16x1xi1>, vector<16x1xf32>
    %62 = vector.shape_cast %61 : vector<16x1xf32> to vector<1x16x1xf32>
    %cst_16 = arith.constant dense<0.000000e+00> : vector<1xf32>
    %63 = vector.multi_reduction <add>, %62, %cst_16 [1, 2] : vector<1x16x1xf32> to vector<1xf32>
    %64 = vector.shape_cast %63 : vector<1xf32> to vector<1x1x1xf32>
    %65 = vector.extract %64[0, 0, 0] : f32 from vector<1x1x1xf32>
    %66 = arith.select %46, %53, %49 : vector<16x1xi1>, vector<16x1xf32>
    %67 = vector.shape_cast %66 : vector<16x1xf32> to vector<1x16x1xf32>
    %cst_17 = arith.constant dense<0.000000e+00> : vector<1xf32>
    %68 = vector.multi_reduction <add>, %67, %cst_17 [1, 2] : vector<1x16x1xf32> to vector<1xf32>
    %69 = vector.shape_cast %68 : vector<1xf32> to vector<1x1x1xf32>
    %70 = vector.extract %69[0, 0, 0] : f32 from vector<1x1x1xf32>
    %cst_18 = arith.constant 5.000000e+01 : f32
    %71 = vector.broadcast %cst_18 : f32 to vector<16x1xf32>
    %72 = arith.cmpf olt, %38, %71 : vector<16x1xf32>
    %73 = arith.extui %72 : vector<16x1xi1> to vector<16x1xi32>
    %74 = arith.sitofp %73 : vector<16x1xi32> to vector<16x1xf32>
    %cst_19 = arith.constant 2.000000e+00 : f32
    %75 = vector.broadcast %cst_19 : f32 to vector<16x1xf32>
    %76 = arith.addf %38, %75 : vector<16x1xf32>
    %77 = math.log %76 : vector<16x1xf32>
    %cst_20 = arith.constant 2.000000e+00 : f32
    %78 = math.log %cst_20 : f32
    %79 = vector.broadcast %78 : f32 to vector<16x1xf32>
    %80 = arith.divf %77, %79 : vector<16x1xf32>
    %81 = arith.divf %74, %80 : vector<16x1xf32>
    %82 = arith.select %46, %81, %49 : vector<16x1xi1>, vector<16x1xf32>
    %83 = vector.shape_cast %82 : vector<16x1xf32> to vector<1x16x1xf32>
    %cst_21 = arith.constant dense<0.000000e+00> : vector<1xf32>
    %84 = vector.multi_reduction <add>, %83, %cst_21 [1, 2] : vector<1x16x1xf32> to vector<1xf32>
    %85 = vector.shape_cast %84 : vector<1xf32> to vector<1x1x1xf32>
    %86 = vector.extract %85[0, 0, 0] : f32 from vector<1x1x1xf32>
    %87 = arith.select %46, %74, %49 : vector<16x1xi1>, vector<16x1xf32>
    %88 = vector.shape_cast %87 : vector<16x1xf32> to vector<1x16x1xf32>
    %cst_22 = arith.constant dense<0.000000e+00> : vector<1xf32>
    %89 = vector.multi_reduction <add>, %88, %cst_22 [1, 2] : vector<1x16x1xf32> to vector<1xf32>
    %90 = vector.shape_cast %89 : vector<1xf32> to vector<1x1x1xf32>
    %91 = vector.extract %90[0, 0, 0] : f32 from vector<1x1x1xf32>
    %cst_23 = arith.constant 1.000000e+00 : f32
    %92 = vector.broadcast %cst_23 : f32 to vector<16x1xf32>
    %93 = arith.addf %38, %92 : vector<16x1xf32>
    %cst_24 = arith.constant 1.000000e+00 : f32
    %94 = vector.broadcast %cst_24 : f32 to vector<16x1xf32>
    %95 = arith.divf %94, %93 : vector<16x1xf32>
    %96 = arith.select %46, %95, %49 : vector<16x1xi1>, vector<16x1xf32>
    %97 = vector.shape_cast %96 : vector<16x1xf32> to vector<1x16x1xf32>
    %cst_25 = arith.constant dense<0.000000e+00> : vector<1xf32>
    %98 = vector.multi_reduction <add>, %97, %cst_25 [1, 2] : vector<1x16x1xf32> to vector<1xf32>
    %99 = vector.shape_cast %98 : vector<1xf32> to vector<1x1x1xf32>
    %100 = vector.extract %99[0, 0, 0] : f32 from vector<1x1x1xf32>
    %101 = arith.divf %38, %48 : vector<16x1xf32>
    %cst_26 = arith.constant 1.000000e+00 : f32
    %102 = vector.broadcast %cst_26 : f32 to vector<16x1xf32>
    %103 = arith.subf %102, %101 : vector<16x1xf32>
    %104 = arith.select %46, %103, %49 : vector<16x1xi1>, vector<16x1xf32>
    %105 = vector.shape_cast %104 : vector<16x1xf32> to vector<1x16x1xf32>
    %cst_27 = arith.constant dense<0.000000e+00> : vector<1xf32>
    %106 = vector.multi_reduction <add>, %105, %cst_27 [1, 2] : vector<1x16x1xf32> to vector<1xf32>
    %107 = vector.shape_cast %106 : vector<1xf32> to vector<1x1x1xf32>
    %108 = vector.extract %107[0, 0, 0] : f32 from vector<1x1x1xf32>
    %109 = tpu.iota {dimensions = array<i32: 2>} : vector<1x8x128xi32>
    %cst_28 = arith.constant 0.000000e+00 : f32
    %110 = vector.broadcast %cst_28 : f32 to vector<1x8x128xf32>
    %c0_i32 = arith.constant 0 : i32
    %111 = vector.broadcast %c0_i32 : i32 to vector<1x8x128xi32>
    %112 = arith.cmpi eq, %109, %111 : vector<1x8x128xi32>
    %113 = vector.broadcast %65 : f32 to vector<1x8x128xf32>
    %114 = arith.select %112, %113, %110 : vector<1x8x128xi1>, vector<1x8x128xf32>
    %c1_i32_29 = arith.constant 1 : i32
    %115 = vector.broadcast %c1_i32_29 : i32 to vector<1x8x128xi32>
    %116 = arith.cmpi eq, %109, %115 : vector<1x8x128xi32>
    %117 = vector.broadcast %70 : f32 to vector<1x8x128xf32>
    %118 = arith.select %116, %117, %114 : vector<1x8x128xi1>, vector<1x8x128xf32>
    %c2_i32 = arith.constant 2 : i32
    %119 = vector.broadcast %c2_i32 : i32 to vector<1x8x128xi32>
    %120 = arith.cmpi eq, %109, %119 : vector<1x8x128xi32>
    %121 = vector.broadcast %86 : f32 to vector<1x8x128xf32>
    %122 = arith.select %120, %121, %118 : vector<1x8x128xi1>, vector<1x8x128xf32>
    %c3_i32 = arith.constant 3 : i32
    %123 = vector.broadcast %c3_i32 : i32 to vector<1x8x128xi32>
    %124 = arith.cmpi eq, %109, %123 : vector<1x8x128xi32>
    %125 = vector.broadcast %91 : f32 to vector<1x8x128xf32>
    %126 = arith.select %124, %125, %122 : vector<1x8x128xi1>, vector<1x8x128xf32>
    %c4_i32 = arith.constant 4 : i32
    %127 = vector.broadcast %c4_i32 : i32 to vector<1x8x128xi32>
    %128 = arith.cmpi eq, %109, %127 : vector<1x8x128xi32>
    %129 = vector.broadcast %100 : f32 to vector<1x8x128xf32>
    %130 = arith.select %128, %129, %126 : vector<1x8x128xi1>, vector<1x8x128xf32>
    %c5_i32 = arith.constant 5 : i32
    %131 = vector.broadcast %c5_i32 : i32 to vector<1x8x128xi32>
    %132 = arith.cmpi eq, %109, %131 : vector<1x8x128xi32>
    %133 = vector.broadcast %108 : f32 to vector<1x8x128xf32>
    %134 = arith.select %132, %133, %130 : vector<1x8x128xi1>, vector<1x8x128xf32>
    %c0_i32_30 = arith.constant 0 : i32
    %135 = arith.cmpi eq, %arg1, %c0_i32_30 : i32
    %136 = arith.extui %135 : i1 to i32
    %c0_i32_31 = arith.constant 0 : i32
    %137 = arith.cmpi ne, %136, %c0_i32_31 : i32
    scf.if %137 {
      %cst_38 = arith.constant 0.000000e+00 : f32
      %141 = vector.broadcast %cst_38 : f32 to vector<1x8x128xf32>
      %c0_39 = arith.constant 0 : index
      %c0_40 = arith.constant 0 : index
      %c0_41 = arith.constant 0 : index
      %142 = vector.load %arg4[%c0_39, %c0_40, %c0_41] : memref<1x8x128xf32, #tpu.memory_space<vmem>>, vector<1x8x128xf32>
      tpu.vector_store %arg4[%c0_39, %c0_40, %c0_41], %141 {strides = array<i32>} : memref<1x8x128xf32, #tpu.memory_space<vmem>>, vector<1x8x128xf32>,
    } else {
    }
    %c0_32 = arith.constant 0 : index
    %c0_33 = arith.constant 0 : index
    %c0_34 = arith.constant 0 : index
    %138 = vector.load %arg4[%c0_32, %c0_33, %c0_34] : memref<1x8x128xf32, #tpu.memory_space<vmem>>, vector<1x8x128xf32>
    %139 = arith.addf %138, %134 : vector<1x8x128xf32>
    %c0_35 = arith.constant 0 : index
    %c0_36 = arith.constant 0 : index
    %c0_37 = arith.constant 0 : index
    %140 = vector.load %arg4[%c0_35, %c0_36, %c0_37] : memref<1x8x128xf32, #tpu.memory_space<vmem>>, vector<1x8x128xf32>
    tpu.vector_store %arg4[%c0_35, %c0_36, %c0_37], %139 {strides = array<i32>} : memref<1x8x128xf32, #tpu.memory_space<vmem>>, vector<1x8x128xf32>,
    return
  }
  func.func @transform_0(%arg0: i32, %arg1: i32) -> (i32, i32) {
    %c1_i32 = arith.constant 1 : i32
    %0 = arith.muli %arg0, %c1_i32 : i32
    %1 = arith.addi %0, %arg1 : i32
    %c0_i32 = arith.constant 0 : i32
    %2 = arith.minsi %1, %c0_i32 : i32
    %c0_i32_0 = arith.constant 0 : i32
    %c0_i32_1 = arith.constant 0 : i32
    return %2, %c0_i32_0 : i32, i32
  }
  func.func @transform_1(%arg0: i32, %arg1: i32) -> (i32, i32) {
    %c1_i32 = arith.constant 1 : i32
    %0 = arith.muli %arg0, %c1_i32 : i32
    %1 = arith.addi %0, %arg1 : i32
    %c0_i32 = arith.constant 0 : i32
    %2 = arith.minsi %1, %c0_i32 : i32
    %c0_i32_0 = arith.constant 0 : i32
    %c0_i32_1 = arith.constant 0 : i32
    return %2, %c0_i32_0 : i32, i32
  }
  func.func @transform_2(%arg0: i32, %arg1: i32) -> (i32, i32, i32) {
    %c0_i32 = arith.constant 0 : i32
    %c0_i32_0 = arith.constant 0 : i32
    %c0_i32_1 = arith.constant 0 : i32
    return %arg0, %c0_i32, %c0_i32_0 : i32, i32, i32
  }
}

</mosaic_0001>

<bundles_post_ra>
// kernel: tpu_custom_call.1
= control target key start
LH: loop header
LB: loop body
LE: loop exit
PB: predicated region body
PF: predicated region fallthrough
CT: control target
= control target key end

     0   :  { %v862_v1 = vmov 1   ;;  %v863_v2 = vmov 0   ;;  %s988_s0 = inlined_call_operand.vmem [shape: f32[16,128], index: 0, kind: input, shape index: {}]   ;;  %s989_s1 = inlined_call_operand.vmem [shape: s32[16,5], index: 1, kind: input, shape index: {}]   ;;  %s990_s2 = inlined_call_operand.hbm [shape: f32[1,8,128], index: 2, kind: output, shape index: {}]  }
   0x1   :  { %v78_v0 = vld [vmem:[%s989_s1] sm:$0xff]  ;;  %814 = vset.pattern.permute.xlu1 %v862_v1  ;;  %813 = vset.pattern.permute.xlu0 %v863_v2 }
   0x2   :  { %7 = vsyncpa [#allocation3], 0  ;;  %95 = vperm.xlu1 %814, %v78_v0   ;;  %85 = vperm.xlu0 %813, %v78_v0   ;;  %v79_v3 = vld [vmem:[%s989_s1 + $0x8] sm:$0xff]  ;;  %v864_v4 = vmov 1.0|1.0   ;;  %v865_v5 = vmov 2   ;;  %v80_v8 = vlaneseq }
   0x3   :  { %760 = vmatprep.subr.bf16.mxu1 %v864_v4  ;;  %744 = vmatprep.subr.bf16.mxu0 %v864_v4  ;;  %v866_v6 = vmov 3   ;;  %v867_v7 = vmov 4   ;;  %v76_v12 = vld [vmem:[%s988_s0] sm:$0xff]  ;;  %v77_v15 = vld [vmem:[%s988_s0 + $0x8] sm:$0xff]  ;;  %v868_v30 = vmov 1.0   ;;  %vm414_vm14 = vcmask 7168  }
   0x4   :  { %761 = vmatpush3.bf16.msra.mxu1 %v864_v4  ;;  %745 = vmatpush3.bf16.msra.mxu0 %v864_v4  ;;  %v925_v11 = vand.u32 127, %v80_v8  ;;  %v569_v16 = vadd.f32 -10000.0, %v76_v12  ;;  %v570_v17 = vadd.f32 -10000.0, %v77_v15  ;;  %v869_v45 = vmov 0.0   ;;  %s870_s21 = smov [#allocation2]  }
   0x5   :  { %762 = vmatprep.subr.bf16.mxu1 %v864_v4  ;;  %746 = vmatprep.subr.bf16.mxu0 %v864_v4  ;;  %s549_s22 = sshll.u32 %s870_s21, 4  ;;  %s550_s22 = int_to_ptr.vmem [resolvable:$true] %s549_s22 }
   0x6   :  { %98 = vperm.xlu1 %814, %v79_v3   ;;  %88 = vperm.xlu0 %813, %v79_v3   ;;  %s838_s23 = scalar_lea.vmem %s550_s22, 128  ;;  %p843_p1 = scmp.lt.s32.totalorder %s550_s22, %s550_s22 }
   0x7   :  { %p839_p0 = scmp.ne.s32.totalorder %s550_s22, %s838_s23  ;;  %p844_p2 = scmp.lt.s32.totalorder %s838_s23, %s838_s23 }
   0x8   :  { %763 = vmatpush3.bf16.msra.mxu1 %v864_v4  ;;  %747 = vmatpush3.bf16.msra.mxu0 %v864_v4 }
   0x9   :  { %764 = vmatprep.subr.bf16.mxu1 %v864_v4  ;;  %748 = vmatprep.subr.bf16.mxu0 %v864_v4  ;;  %p845_p3 = por %p844_p2, %p843_p1 }
   0xa   :  { %816 = vset.pattern.permute.xlu1 %v865_v5  ;;  %815 = vset.pattern.permute.xlu0 %v865_v5 }
   0xb   :  { %108 = vperm.xlu1 %816, %v79_v3   ;;  %105 = vperm.xlu0 %815, %v78_v0   ;;  %p846_p4 = pnand %p845_p3, %p839_p0 }
   0xc   :  { %765 = vmatpush3.bf16.msra.mxu1 %v864_v4  ;;  %749 = vmatpush3.bf16.msra.mxu0 %v864_v4 }
   0xd   :  { %766 = vmatprep.subr.bf16.mxu1 %v864_v4  ;;  %750 = vmatprep.subr.bf16.mxu0 %v864_v4 }
   0xf   :  { %817 = vset.pattern.permute.xlu1 %v866_v6  ;;  %818 = vset.pattern.permute.xlu0 %v866_v6 }
  0x10   :  { %115 = vperm.xlu1 %817, %v78_v0   ;;  %118 = vperm.xlu0 %818, %v79_v3  }
  0x11   :  { %767 = vmatpush3.bf16.msra.mxu1 %v864_v4  ;;  %751 = vmatpush3.bf16.msra.mxu0 %v864_v4 }
  0x12   :  { %768 = vmatprep.subr.bf16.mxu1 %v864_v4  ;;  %752 = vmatprep.subr.bf16.mxu0 %v864_v4 }
  0x14   :  { %819 = vset.pattern.permute.xlu1 %v867_v7  ;;  %820 = vset.pattern.permute.xlu0 %v863_v2 }
  0x15   :  { %125 = vperm.xlu1 %819, %v78_v0   ;;  %769 = vmatpush3.bf16.msra.mxu1 %v864_v4 }
  0x16   :  { %770 = vmatprep.subr.bf16.mxu1 %v864_v4  ;;  %753 = vmatpush3.bf16.msra.mxu0 %v864_v4 }
  0x17   :  { %754 = vmatprep.subr.bf16.mxu0 %v864_v4 }
  0x19   :  { %128 = vperm.xlu1 %819, %v79_v3   ;;  %771 = vmatpush3.bf16.msra.mxu1 %v864_v4 }
  0x1a   :  { %772 = vmatprep.subr.bf16.mxu1 %v864_v4  ;;  %755 = vmatpush3.bf16.msra.mxu0 %v864_v4 }
  0x1b   :  { %756 = vmatprep.subr.bf16.mxu0 %v864_v4 }
  0x1d   :  { %773 = vmatpush3.bf16.msra.mxu1 %v864_v4  ;;  %821 = vset.pattern.permute.xlu1 %v863_v2 }
  0x1e   :  { %774 = vmatprep.subr.bf16.mxu1 %v864_v4  ;;  %757 = vmatpush3.bf16.msra.mxu0 %v864_v4 }
  0x1f   :  { %758 = vmatprep.subr.bf16.mxu0 %v864_v4 }
  0x21   :  { %775 = vmatpush3.bf16.msra.mxu1 %v864_v4 }
  0x22   :  { %759 = vmatpush3.bf16.msra.mxu0 %v864_v4 }
  0x23   :  { %776 = vmatprep.subr.bf16.mxu0 %v864_v4 }
  0x81   :  { %v96_v9 = vpop.permute.xlu1 %95  ;;  %v86_v10 = vpop.permute.xlu0 %85 }
  0x82   :  { %vm90_vm0 = vcmp.eq.s32.totalorder %v925_v11, %v86_v10  ;;  %vm100_vm2 = vcmp.eq.s32.totalorder %v925_v11, %v96_v9 }
  0x83   :  { %v92_v20 = vsel %vm90_vm0, %v569_v16, %v76_v12 }
  0x84   :  { %v102_v23 = vsel %vm100_vm2, %v569_v16, %v92_v20 }
  0x85   :  { %v99_v13 = vpop.permute.xlu1 %98  ;;  %v89_v14 = vpop.permute.xlu0 %88 }
  0x86   :  { %vm91_vm1 = vcmp.eq.s32.totalorder %v925_v11, %v89_v14  ;;  %vm101_vm3 = vcmp.eq.s32.totalorder %v925_v11, %v99_v13 }
  0x87   :  { %v93_v21 = vsel %vm91_vm1, %v570_v17, %v77_v15 }
  0x88   :  { %v103_v22 = vsel %vm101_vm3, %v570_v17, %v93_v21  ;;  %vm517_vm3 = vcmp.eq.s32.totalorder %v925_v11, 0 }
  0x8a   :  { %v109_v18 = vpop.permute.xlu1 %108  ;;  %v106_v19 = vpop.permute.xlu0 %105 }
  0x8b   :  { %vm111_vm4 = vcmp.eq.s32.totalorder %v925_v11, %v109_v18  ;;  %vm110_vm5 = vcmp.eq.s32.totalorder %v925_v11, %v106_v19 }
  0x8c   :  { %v113_v26 = vsel %vm111_vm4, %v570_v17, %v103_v22  ;;  %v112_v27 = vsel %vm110_vm5, %v569_v16, %v102_v23  ;;  %vm520_vm4 = vcmp.eq.s32.totalorder %v925_v11, 1  ;;  %vm523_vm5 = vcmp.eq.s32.totalorder %v925_v11, 2 }
  0x8f   :  { %v116_v24 = vpop.permute.xlu1 %115  ;;  %v119_v25 = vpop.permute.xlu0 %118 }
  0x90   :  { %vm120_vm6 = vcmp.eq.s32.totalorder %v925_v11, %v116_v24  ;;  %vm121_vm7 = vcmp.eq.s32.totalorder %v925_v11, %v119_v25 }
  0x91   :  { %v123_v28 = vsel %vm121_vm7, %v570_v17, %v113_v26  ;;  %v122_v29 = vsel %vm120_vm6, %v569_v16, %v112_v27  ;;  %vm526_vm6 = vcmp.eq.s32.totalorder %v925_v11, 3  ;;  %vm529_vm7 = vcmp.eq.s32.totalorder %v925_v11, 4 }
  0x92   :  { %vm209_vm8 = vcmp.gt.f32.partialorder %v122_v29, -10000.0  ;;  %vm210_vm9 = vcmp.gt.f32.partialorder %v123_v28, -10000.0 }
  0x93   :  { %706 = vmatprep.mubr.msk.f32.mxu1 %vm209_vm8, %v868_v30  ;;  %vm532_vm8 = vcmp.eq.s32.totalorder %v925_v11, 5 }
  0x94   :  { %v126_v31 = vpop.permute.xlu1 %125  ;;  %707 = vmatmul.mubr.msk.f32.vlgmr.msra.gmra.mrb[0].mxu1 %vm210_vm9, %v868_v30 }
  0x95   :  { %vm130_vm10 = vcmp.eq.s32.totalorder %v925_v11, %v126_v31 }
  0x96   :  { %671 = vmatprep.mubr.msk.f32.mxu0 %vm130_vm10, %v122_v29 }
  0x98   :  { %v129_v32 = vpop.permute.xlu1 %128 }
  0x99   :  { %vm131_vm11 = vcmp.eq.s32.totalorder %v925_v11, %v129_v32 }
  0x9a   :  { %672 = vmatmul.mubr.msk.f32.vlgmr.msra.gmra.mrb[0].mxu0 %vm131_vm11, %v123_v28 }
  0x9b   :  { %777 = vmatpush3.bf16.msra.mxu0 %v864_v4 }
  0x9c   :  { %778 = vmatprep.subr.bf16.mxu0 %v864_v4 }
  0x9f   :  { %779 = vmatpush3.bf16.msra.mxu0 %v864_v4 }
  0xa0   :  { %780 = vmatprep.subr.bf16.mxu0 %v864_v4 }
  0xa3   :  { %781 = vmatpush3.bf16.msra.mxu0 %v864_v4 }
  0xa4   :  { %782 = vmatprep.subr.bf16.mxu0 %v864_v4 }
  0xa7   :  { %783 = vmatpush3.bf16.msra.mxu0 %v864_v4 }
  0xa8   :  { %784 = vmatprep.subr.bf16.mxu0 %v864_v4 }
  0xab   :  { %785 = vmatpush3.bf16.msra.mxu0 %v864_v4 }
  0xac   :  { %786 = vmatprep.subr.bf16.mxu0 %v864_v4 }
  0xaf   :  { %787 = vmatpush3.bf16.msra.mxu0 %v864_v4 }
  0xb0   :  { %788 = vmatprep.subr.bf16.mxu0 %v864_v4 }
  0xb3   :  { %789 = vmatpush3.bf16.msra.mxu0 %v864_v4 }
  0xb4   :  { %790 = vmatprep.subr.bf16.mxu0 %v864_v4 }
  0xb7   :  { %791 = vmatpush3.bf16.msra.mxu0 %v864_v4 }
 0x167   :  { %v708_v33 = vpop.f32.mrb[0].mxu1 }
 0x168   :  { %v281_v34 = vpop.f32.mrb[1].mxu1  ;;  %822 = vrcp.f32 %v708_v33 }
 0x169   :  { %824 = vrcp.f32 %v281_v34 }
 0x16d   :  { %v673_v35 = vpop.f32.mrb[0].mxu0 }
 0x16e   :  { %297 = vperm.xlu1 %821, %v673_v35   ;;  %v200_v36 = vpop.f32.mrb[1].mxu0 }
 0x16f   :  { %292 = vperm.xlu0 %820, %v200_v36  }
 0x172   :  { %v823_v49 = vpop.eup %822 }
 0x173   :  { %v825_v53 = vpop.eup %824 }
 0x1ed   :  { %v298_v37 = vpop.permute.xlu1 %297 }
 0x1ee   :  { %v293_v38 = vpop.permute.xlu0 %292  ;;  %vm301_vm13 = vcmp.lt.f32.partialorder %v298_v37, %v123_v28 }
 0x1ef   :  { %vm300_vm12 = vcmp.lt.f32.partialorder %v293_v38, %v122_v29 }
 0x1f0   :  { %741 = vmatprep.mubr.msk.f32.mxu0 %vm300_vm12, %v868_v30 }
 0x1f1   :  { %742 = vmatmul.mubr.msk.f32.vlgmr.msra.gmra.mrb[2].mxu0 %vm301_vm13, %v868_v30 }
 0x2c4   :  { %v743_v39 = vpop.f32.mrb[2].mxu0 }
 0x2c5   :  { %v400_v40 = vadd.f32 2.0, %v743_v39  ;;  %v478_v41 = vadd.f32 1.0, %v743_v39  ;;  %v372_v42 = vpop.f32.mrb[3].mxu0  ;;  %vm394_vm15 = vcmp.lt.f32.partialorder %v743_v39, 10.0  ;;  %vm442_vm0 = vcmp.lt.f32.partialorder %v743_v39, 50.0 }
 0x2c6   :  { %v399_v43 = vadd.f32 2.0, %v372_v42  ;;  %vm441_vm1 = vcmp.lt.f32.partialorder %v372_v42, 50.0  ;;  %v477_v44 = vadd.f32 1.0, %v372_v42  ;;  %vm393_vm2 = vcmp.lt.f32.partialorder %v372_v42, 10.0 }
 0x2c7   :  { %826 = vlog2.f32 %v400_v40  ;;  %v581_v46 = vsel %vm393_vm2, 1.0, %v869_v45  ;;  %v582_v47 = vsel %vm394_vm15, 1.0, %v869_v45  ;;  %v583_v48 = vsel %vm441_vm1, 1.0, %v869_v45 }
 0x2c8   :  { %828 = vrcp.f32 %v478_v41  ;;  %v429_v50 = vsel %vm414_vm14, %v581_v46, 0.0  ;;  %v430_v51 = vsel %vm414_vm14, %v582_v47, 0.0  ;;  %v584_v52 = vsel %vm442_vm0, 1.0, %v869_v45 }
 0x2c9   :  { %830 = vlog2.f32 %v399_v43  ;;  %v431_v54 = vadd.f32 %v430_v51, %v429_v50  ;;  %v465_v55 = vsel %vm414_vm14, %v583_v48, 0.0  ;;  %v466_v56 = vsel %vm414_vm14, %v584_v52, 0.0 }
 0x2ca   :  { %832 = vrcp.f32 %v477_v44  ;;  %v467_v57 = vadd.f32 %v466_v56, %v465_v55  ;;  %v498_v58 = vmul.f32 %v825_v53, %v372_v42  ;;  %v500_v59 = vmul.f32 %v823_v49, %v743_v39 }
 0x2cb   :  { %432 = vadd.xlane.f32.xlu0 %v431_v54 }
 0x2cc   :  { %v501_v60 = vsub.f32 1.0, %v498_v58  ;;  %v502_v61 = vsub.f32 1.0, %v500_v59 }
 0x2ce   :  { %v505_v62 = vsel %vm414_vm14, %v501_v60, 0.0  ;;  %v506_v63 = vsel %vm414_vm14, %v502_v61, 0.0 }
 0x2cf   :  { %v507_v0 = vadd.f32 %v506_v63, %v505_v62 }
 0x2d1   :  { %v827_v1 = vpop.eup %826 }
 0x2d2   :  { %v829_v2 = vpop.eup %828  ;;  %v404_v3 = vmul.f32 0.6931472, %v827_v1 }
 0x2d3   :  { %v831_v4 = vpop.eup %830  ;;  %v486_v5 = vsel %vm414_vm14, %v829_v2, 0.0 }
 0x2d4   :  { %v833_v6 = vpop.eup %832  ;;  %v407_v7 = vmul.f32 1.442695, %v404_v3  ;;  %v402_v8 = vmul.f32 0.6931472, %v831_v4 }
 0x2d5   :  { %v485_v9 = vsel %vm414_vm14, %v833_v6, 0.0 }
 0x2d6   :  { %834 = vrcp.f32 %v407_v7  ;;  %v406_v10 = vmul.f32 1.442695, %v402_v8  ;;  %v487_v12 = vadd.f32 %v486_v5, %v485_v9 }
 0x2d8   :  { %836 = vrcp.f32 %v406_v10 }
 0x2e0   :  { %v835_v13 = vpop.eup %834 }
 0x2e1   :  { %v448_v14 = vmul.f32 %v835_v13, %v584_v52  ;;  %v411_v15 = vmul.f32 %v835_v13, %v582_v47 }
 0x2e2   :  { %v837_v16 = vpop.eup %836 }
 0x2e3   :  { %v447_v17 = vmul.f32 %v837_v16, %v583_v48  ;;  %v452_v18 = vsel %vm414_vm14, %v448_v14, 0.0  ;;  %v409_v19 = vmul.f32 %v837_v16, %v581_v46  ;;  %v416_v20 = vsel %vm414_vm14, %v411_v15, 0.0 }
 0x2e5   :  { %v451_v21 = vsel %vm414_vm14, %v447_v17, 0.0  ;;  %v415_v22 = vsel %vm414_vm14, %v409_v19, 0.0 }
 0x2e6   :  { %v453_v23 = vadd.f32 %v452_v18, %v451_v21  ;;  %v417_v24 = vadd.f32 %v416_v20, %v415_v22 }
 0x2e8   :  { %454 = vadd.xlane.f32.xlu0 %v453_v23  ;;  %418 = vadd.xlane.f32.xlu1 %v417_v24 }
 0x2ec   :  { %488 = vadd.xlane.f32.xlu0 %v487_v12  ;;  %468 = vadd.xlane.f32.xlu1 %v467_v57 }
 0x2f0   :  { %508 = vadd.xlane.f32.xlu1 %v507_v0 }
 0x358   :  { %v433_v25 = vpop.xlane.xlu0 %432 }
 0x359   :  { %v434_v26 = vrot.slane %v433_v25, 4 }
 0x35b   :  { %v435_v27 = vadd.f32 %v434_v26, %v433_v25 }
 0x35d   :  { %v436_v28 = vrot.slane %v435_v27, 2 }
 0x35f   :  { %v437_v37 = vadd.f32 %v436_v28, %v435_v27 }
 0x361   :  { %v438_v47 = vrot.slane %v437_v37, 1 }
 0x363   :  { %v439_v57 = vadd.f32 %v438_v47, %v437_v37 }
 0x375   :  { %v455_v29 = vpop.xlane.xlu0 %454  ;;  %v419_v30 = vpop.xlane.xlu1 %418 }
 0x376   :  { %v456_v31 = vrot.slane %v455_v29, 4  ;;  %v420_v32 = vrot.slane %v419_v30, 4 }
 0x378   :  { %v457_v33 = vadd.f32 %v456_v31, %v455_v29  ;;  %v421_v34 = vadd.f32 %v420_v32, %v419_v30 }
 0x379   :  { %v489_v35 = vpop.xlane.xlu0 %488  ;;  %v469_v36 = vpop.xlane.xlu1 %468 }
 0x37a   :  { %v458_v38 = vrot.slane %v457_v33, 2  ;;  %v422_v39 = vrot.slane %v421_v34, 2  ;;  %v490_v40 = vrot.slane %v489_v35, 4  ;;  %v470_v41 = vrot.slane %v469_v36, 4 }
 0x37c   :  { %v491_v42 = vadd.f32 %v490_v40, %v489_v35  ;;  %v471_v43 = vadd.f32 %v470_v41, %v469_v36  ;;  %v423_v44 = vadd.f32 %v422_v39, %v421_v34  ;;  %v459_v45 = vadd.f32 %v458_v38, %v457_v33 }
 0x37d   :  { %v509_v46 = vpop.xlane.xlu1 %508 }
 0x37e   :  { %v492_v48 = vrot.slane %v491_v42, 2  ;;  %v472_v49 = vrot.slane %v471_v43, 2  ;;  %v510_v50 = vrot.slane %v509_v46, 4  ;;  %v424_v51 = vrot.slane %v423_v44, 1 }
 0x37f   :  { %v460_v52 = vrot.slane %v459_v45, 1 }
 0x380   :  { %v493_v53 = vadd.f32 %v492_v48, %v491_v42  ;;  %v511_v54 = vadd.f32 %v510_v50, %v509_v46  ;;  %v425_v55 = vadd.f32 %v424_v51, %v423_v44  ;;  %v473_v56 = vadd.f32 %v472_v49, %v471_v43 }
 0x381   :  { %v461_v58 = vadd.f32 %v460_v52, %v459_v45 }
 0x382   :  { %v512_v59 = vrot.slane %v511_v54, 2  ;;  %792 = vpush %v425_v55  ;;  %v474_v60 = vrot.slane %v473_v56, 1  ;;  %v494_v61 = vrot.slane %v493_v53, 1 }
 0x383   :  { %794 = vpush %v439_v57 }
 0x384   :  { %v513_v62 = vadd.f32 %v512_v59, %v511_v54  ;;  %796 = vpush %v461_v58  ;;  %v475_v63 = vadd.f32 %v474_v60, %v473_v56  ;;  %v495_v0 = vadd.f32 %v494_v61, %v493_v53 }
 0x386   :  { %798 = vpush %v475_v63  ;;  %v514_v1 = vrot.slane %v513_v62, 1 }
 0x387   :  { %800 = vpush %v495_v0 }
 0x388   :  { %v515_v2 = vadd.f32 %v514_v1, %v513_v62 }
 0x38a   :  { %802 = vpush %v515_v2 }
 0x3b3   :  { %s793_s0 = spop %792 }
 0x3b4   :  { %v518_v3 = vstv %s793_s0  ;;  %s795_s16 = spop %794 }
 0x3b5   :  { %v519_v4 = vsel %vm517_vm3, %v518_v3, 0.0  ;;  %v521_v5 = vstv %s795_s16  ;;  %s797_s17 = spop %796 }
 0x3b6   :  { %v522_v6 = vsel %vm520_vm4, %v521_v5, %v519_v4  ;;  %v524_v7 = vstv %s797_s17 }
 0x3b7   :  { %v525_v8 = vsel %vm523_vm5, %v524_v7, %v522_v6  ;;  %s799_s18 = spop %798 }
 0x3b8   :  { %v527_v9 = vstv %s799_s18  ;;  %s801_s19 = spop %800 }
 0x3b9   :  { %v528_v10 = vsel %vm526_vm6, %v527_v9, %v525_v8  ;;  %v530_v12 = vstv %s801_s19 }
 0x3ba   :  { %v531_v13 = vsel %vm529_vm7, %v530_v12, %v528_v10 }
 0x3bb   :  { %s803_s20 = spop %802 }
 0x3bc   :  { %v533_v14 = vstv %s803_s20 }
 0x3bd   :  { %v534_v15 = vsel %vm532_vm8, %v533_v14, %v531_v13 }
 0x3be   :  { %542 = vst [vmem:[#allocation2] sm:$0xff] %v534_v15 }
 0x3bf   :  { %849 = shalt.err (!%p846_p4)
}
 0x3c0   :  { %s850_s26 = scalar_lea.hbm %s990_s2, 128 }
 0x3c1   :  { %p851_p5 = scmp.ne.s32.totalorder %s990_s2, %s850_s26  ;;  %p854_p6 = scmp.lt.u32.totalorder %s850_s26, %s990_s2 }
 0x3c3   :  { %p856_p7 = pnand %p854_p6, %p851_p5 }
 0x3c5   :  { %859 = shalt.err (!%p856_p7)
}
 0x3c6   :  { %552 = dma.vmem_to_hbm [thread:$0]  %s550_s22, 128, %s990_s2, [#allocation3]  }
 0x3c7   :  { %860 = dma.done.wait [#allocation3], 128  }
 0x3c8   :  { %861 = vsyncadd [#allocation3], 4294967168 }
 0x3c9   :  { %556 = vsyncpa [#allocation3], 1 }

</bundles_post_ra>
